<compile_context>
chip_gen: v7x
topology: tpu7x:2x2x1
jax: 0.10.0
libtpu: 0.0.40
codegen_flags: <defaults>
</compile_context>

<pallas_src>
import jax
import jax.numpy as jnp
from jax.experimental import pallas as pl
from jax.experimental.pallas import tpu as pltpu


def _identity_kernel(x_ref, o_ref):
    # Pure pass-through: whole-tile load + wide unmasked store.
    o_ref[...] = x_ref[...]


_LANE_CANDIDATES = (4096, 2048, 1024, 512, 256, 128)
_TARGET_TILE_BYTES = 2 * 1024 * 1024  # ~2 MiB/tile; safe across v5e/v6e/v7x


def _pick_tile_rows(rows, lane, itemsize, sublane_min):
    """Largest sublane-aligned row tile targeting ~2 MiB, with >= 2 blocks
    whenever the slab is big enough (keeps both v7x TensorCores busy)."""
    if rows <= sublane_min:
        return rows  # full-dim block (allowed even when < 8 sublanes)
    target = max(1, _TARGET_TILE_BYTES // (lane * itemsize))
    tile_rows = min(rows, target)
    tile_rows = max(sublane_min, (tile_rows // sublane_min) * sublane_min)
    if rows >= 2 * sublane_min and tile_rows >= rows:
        half = (rows // 2 // sublane_min) * sublane_min
        tile_rows = max(sublane_min, half)
    return tile_rows


def _run_identity_copy(slab, tile_rows, lane):
    rows = slab.shape[0]
    grid = (pl.cdiv(rows, tile_rows),)
    itemsize = jnp.dtype(slab.dtype).itemsize
    cost = pl.CostEstimate(
        flops=0,
        transcendentals=0,
        bytes_accessed=2 * rows * lane * itemsize,
    )
    return pl.pallas_call(
        _identity_kernel,
        out_shape=jax.ShapeDtypeStruct((rows, lane), slab.dtype),
        grid_spec=pltpu.PrefetchScalarGridSpec(
            num_scalar_prefetch=0,
            grid=grid,
            in_specs=[pl.BlockSpec((tile_rows, lane), lambda i: (i, 0))],
            out_specs=pl.BlockSpec((tile_rows, lane), lambda i: (i, 0)),
        ),
        cost_estimate=cost,
        compiler_params=pltpu.CompilerParams(
            dimension_semantics=("parallel",),
        ),
    )(slab)


def _pallas_identity_copy(x):
    """Materialized identity: streams x HBM->VMEM->HBM into a fresh buffer."""
    orig_shape = x.shape
    dtype = x.dtype

    total = 1
    for d in orig_shape:
        total *= d
    if total == 0:
        return x  # empty-tensor guard

    itemsize = jnp.dtype(dtype).itemsize
    # dtype-aware minimum sublane tile: 8 (f32) / 16 (bf16) / 32 (int8/fp8)
    sublane_min = max(8, 32 // max(1, itemsize))

    # Prefer the widest lane dim that still leaves >= sublane_min rows; else
    # the widest lane dim that divides total at all.
    lane = None
    for cand in _LANE_CANDIDATES:
        if total % cand == 0 and (total // cand) >= sublane_min:
            lane = cand
            break
    if lane is None:
        for cand in _LANE_CANDIDATES:
            if total % cand == 0:
                lane = cand
                break

    if lane is not None:
        # Common case: lane-dense slab, no padding, no extra HBM pass.
        rows = total // lane
        slab = jnp.reshape(x, (rows, lane))
        tile_rows = _pick_tile_rows(rows, lane, itemsize, sublane_min)
        out = _run_identity_copy(slab, tile_rows, lane)
        return jnp.reshape(out, orig_shape)

    # Ragged element count (total % 128 != 0).
    if total * itemsize <= 4 * 1024 * 1024:
        # Single whole-array block: legal regardless of (8,128) alignment and
        # avoids any pad/concat/slice HBM round trips.
        slab = jnp.reshape(x, (1, total))
        out = pl.pallas_call(
            _identity_kernel,
            out_shape=jax.ShapeDtypeStruct((1, total), dtype),
        )(slab)
        return jnp.reshape(out, orig_shape)

    # TODO(synk): large ragged tensors could use a masked tail store
    # (scalar-prefetched `total` + pltpu.store mask) instead of this padded
    # round trip; kept simple because the default forward path returns x and
    # this branch is rare.
    lane = 128
    pad = (-total) % lane
    flat = jnp.reshape(x, (total,))
    flat = jnp.concatenate([flat, jnp.zeros((pad,), dtype=dtype)])
    rows = (total + pad) // lane
    slab = jnp.reshape(flat, (rows, lane))
    tile_rows = _pick_tile_rows(rows, lane, itemsize, sublane_min)
    out = _run_identity_copy(slab, tile_rows, lane)
    out_flat = jnp.reshape(out, (rows * lane,))[:total]
    return jnp.reshape(out_flat, orig_shape)


def my_model_forward(x, materialize=False):
    """MyModel.forward() translation.

    The original forward() is `pass` (no compute / returns None); the closest
    meaningful semantics is identity.  The default path performs ZERO HBM
    traffic — it simply returns x.  Set materialize=True to force a Pallas
    streaming copy into a fresh output buffer.
    """
    # TODO(synk): original forward() returns None; we return the input instead
    # of fabricating computation.
    if not materialize:
        return x
    return _pallas_identity_copy(x)


if __name__ == "__main__":
    key = jax.random.PRNGKey(0)

    # Small NCHW input consistent with a conv-style model: batch=2, C=4, 16x16.
    x = jax.random.normal(key, (2, 4, 16, 16), dtype=jnp.float32)

    # Default (recommended) path: zero data movement.
    y_fast = my_model_forward(x)
    jax.block_until_ready(y_fast)
    assert y_fast.shape == x.shape and y_fast.dtype == x.dtype
    assert bool(jnp.allclose(y_fast, x)), "zero-copy identity mismatch"

    # Exercise the Pallas streaming-copy kernel once (lane-aligned path).
    y = my_model_forward(x, materialize=True)
    jax.block_until_ready(y)
    assert y.shape == x.shape and y.dtype == x.dtype
    assert bool(jnp.allclose(y, x)), "identity kernel mismatch (aligned path)"

    # Ragged element count (3*5*7 = 105) exercises the whole-array-block path.
    x2 = jax.random.normal(jax.random.PRNGKey(1), (3, 5, 7), dtype=jnp.float32)
    y2 = my_model_forward(x2, materialize=True)
    jax.block_until_ready(y2)
    assert y2.shape == x2.shape and y2.dtype == x2.dtype
    assert bool(jnp.allclose(y2, x2)), "identity kernel mismatch (ragged path)"

    print("KERNEL_OK")
</pallas_src>

<mosaic_0001>
module attributes {stable_mosaic.version = 11 : i64} {
  func.func @_identity_kernel(%arg0: i32, %arg1: memref<8x256xf32, #tpu.memory_space<vmem>>, %arg2: memref<8x256xf32, #tpu.memory_space<vmem>>) attributes {dimension_semantics = [#tpu.dimension_semantics<parallel>], iteration_bounds = array<i64: 1>, scalar_prefetch = 0 : i64, scratch_operands = 0 : i64, tpu.core_type = #tpu.core_type<tc>, window_params = [{transform_indices = @transform_0, window_bounds = array<i64: 8, 256>}, {transform_indices = @transform_1, window_bounds = array<i64: 8, 256>}]} {
    %c0 = arith.constant 0 : index
    %c0_0 = arith.constant 0 : index
    %0 = vector.load %arg1[%c0, %c0_0] : memref<8x256xf32, #tpu.memory_space<vmem>>, vector<8x256xf32>
    %c0_1 = arith.constant 0 : index
    %c0_2 = arith.constant 0 : index
    %1 = vector.load %arg2[%c0_1, %c0_2] : memref<8x256xf32, #tpu.memory_space<vmem>>, vector<8x256xf32>
    tpu.vector_store %arg2[%c0_1, %c0_2], %0 {strides = array<i32>} : memref<8x256xf32, #tpu.memory_space<vmem>>, vector<8x256xf32>,
    return
  }
  func.func @transform_0(%arg0: i32) -> (i32, i32) {
    %c0_i32 = arith.constant 0 : i32
    %c0_i32_0 = arith.constant 0 : i32
    return %arg0, %c0_i32 : i32, i32
  }
  func.func @transform_1(%arg0: i32) -> (i32, i32) {
    %c0_i32 = arith.constant 0 : i32
    %c0_i32_0 = arith.constant 0 : i32
    return %arg0, %c0_i32 : i32, i32
  }
}

</mosaic_0001>

<bundles_post_ra>
// kernel: tpu_custom_call.1
= control target key start
LH: loop header
LB: loop body
LE: loop exit
PB: predicated region body
PF: predicated region fallthrough
CT: control target
= control target key end

     0   :  { %6 = vsyncpa [#allocation3], 0  ;;  %s126_s0 = inlined_call_operand.hbm [shape: f32[8,256], index: 0, kind: input, shape index: {}]   ;;  %s127_s1 = inlined_call_operand.hbm [shape: f32[8,256], index: 1, kind: output, shape index: {}]  }
   0x1   :  { %7 = vsyncpa [#allocation4], 0  ;;  %s90_s6 = smov [#allocation2]   ;;  %s42_s10 = scalar_lea.hbm %s126_s0, 256 }
   0x2   :  { %s14_s7 = sshll.u32 %s90_s6, 4  ;;  %p43_p0 = scmp.ne.s32.totalorder %s126_s0, %s42_s10  ;;  %s15_s7 = int_to_ptr.vmem [resolvable:$true] %s14_s7 }
   0x3   :  { %p46_p1 = scmp.lt.u32.totalorder %s42_s10, %s126_s0 }
   0x5   :  { %p48_p2 = pnand %p46_p1, %p43_p0 }
   0x7   :  { %51 = shalt.err (!%p48_p2)
}
   0x8   :  { %s52_s15 = scalar_lea.vmem %s15_s7, 256  ;;  %p57_p4 = scmp.lt.s32.totalorder %s15_s7, %s15_s7 }
   0x9   :  { %p53_p3 = scmp.ne.s32.totalorder %s15_s7, %s52_s15  ;;  %p58_p5 = scmp.lt.s32.totalorder %s52_s15, %s52_s15 }
   0xb   :  { %p59_p6 = por %p58_p5, %p57_p4 }
   0xd   :  { %p60_p7 = pnand %p59_p6, %p53_p3 }
   0xf   :  { %63 = shalt.err (!%p60_p7)
}
  0x10   :  { %17 = dma.hbm_to_vmem [thread:$0]  %s126_s0, 256, %s15_s7, [#allocation3]  }
  0x11   :  { %86 = dma.done.wait [#allocation3], 256  }
  0x12   :  { %87 = vsyncadd [#allocation3], 4294967040  ;;  %s91_s18 = smov [#allocation5]   ;;  %v21_v0 = vld [vmem:[#allocation2] sm:$0xff]  ;;  %v22_v1 = vld [vmem:[#allocation2 + $0x8] sm:$0xff] }
  0x13   :  { %s31_s19 = sshll.u32 %s91_s18, 4  ;;  %23 = vst [vmem:[#allocation5] sm:$0xff] %v21_v0  ;;  %24 = vst [vmem:[#allocation5 + $0x8] sm:$0xff] %v22_v1  ;;  %s32_s19 = int_to_ptr.vmem [resolvable:$true] %s31_s19 }
  0x14   :  { %s64_s20 = scalar_lea.vmem %s32_s19, 256  ;;  %p69_p9 = scmp.lt.s32.totalorder %s32_s19, %s32_s19 }
  0x15   :  { %p65_p8 = scmp.ne.s32.totalorder %s32_s19, %s64_s20  ;;  %p70_p10 = scmp.lt.s32.totalorder %s64_s20, %s64_s20 }
  0x17   :  { %p71_p11 = por %p70_p10, %p69_p9 }
  0x19   :  { %p72_p12 = pnand %p71_p11, %p65_p8 }
  0x1b   :  { %75 = shalt.err (!%p72_p12)
}
  0x1c   :  { %s76_s0 = scalar_lea.hbm %s127_s1, 256 }
  0x1d   :  { %p77_p13 = scmp.ne.s32.totalorder %s127_s1, %s76_s0  ;;  %p80_p0 = scmp.lt.u32.totalorder %s76_s0, %s127_s1 }
  0x1f   :  { %p82_p1 = pnand %p80_p0, %p77_p13 }
  0x21   :  { %85 = shalt.err (!%p82_p1)
}
  0x22   :  { %34 = dma.vmem_to_hbm [thread:$0]  %s32_s19, 256, %s127_s1, [#allocation4]  }
  0x23   :  { %88 = dma.done.wait [#allocation4], 256  }
  0x24   :  { %89 = vsyncadd [#allocation4], 4294967040 }
  0x25   :  { %38 = vsyncpa [#allocation3], 1 }
  0x26   :  { %39 = vsyncpa [#allocation4], 1 }

</bundles_post_ra>
